<compile_context>
chip_gen: v7x
topology: tpu7x:2x2x1
jax: 0.10.0
libtpu: 0.0.40
codegen_flags: <defaults>
</compile_context>

<pallas_src>
import functools

import jax
import jax.numpy as jnp
from jax.experimental import pallas as pl
from jax.experimental.pallas import tpu as pltpu


def critic_kernel(s_ref, a_ref, w1s_ref, w1a_ref, b1_ref, w2_ref, b2_ref,
                  w3_ref, b3_ref, q_ref, *, compute_dtype):
    # fc1 on the split, pre-cast weight: state @ W1s + action @ W1a + b1.
    s = s_ref[...].astype(compute_dtype)                          # (TB, S)
    a = a_ref[...].astype(compute_dtype)                          # (TB, A)
    h1 = (jnp.dot(s, w1s_ref[...], preferred_element_type=jnp.float32)
          + jnp.dot(a, w1a_ref[...], preferred_element_type=jnp.float32)
          + b1_ref[...])                                          # (TB, H) f32
    h1 = jnp.maximum(h1, 0.0)

    # fc2 + ReLU (compute-dtype MXU operands, f32 accumulate).
    h2 = jnp.dot(h1.astype(compute_dtype), w2_ref[...],
                 preferred_element_type=jnp.float32) + b2_ref[...]
    h2 = jnp.maximum(h2, 0.0)                                     # (TB, H) f32

    # fc3 (N=1): VPU multiply + lane reduction instead of a 1-column MXU pass.
    q = jnp.sum(h2 * w3_ref[...], axis=-1, keepdims=True) + b3_ref[0]
    q_ref[...] = q.astype(q_ref.dtype)                            # (TB, 1)


def prepare_critic_params(params, state_size, compute_dtype=jnp.bfloat16):
    """One-time param prep: transpose, split W1, pre-cast weights, 2-D biases.

    Run once after init / checkpoint load, NOT per forward.  `compute_dtype`
    is the MXU operand dtype (bf16 recommended on v5e/v6e/v7x; f32 for exact
    parity with the PyTorch reference).
    """
    w1, b1, w2, b2, w3, b3 = params
    H = w1.shape[0]
    w1_t = jnp.asarray(w1, jnp.float32).T                         # (S+A, H)
    w1s = w1_t[:state_size].astype(compute_dtype)                 # (S, H)
    w1a = w1_t[state_size:].astype(compute_dtype)                 # (A, H)
    w2_t = jnp.asarray(w2, jnp.float32).T.astype(compute_dtype)   # (H, H)
    w3_row = jnp.asarray(w3, jnp.float32).reshape(1, H)           # (1, H) f32 (VPU path)
    b1_2d = jnp.asarray(b1, jnp.float32).reshape(1, H)
    b2_2d = jnp.asarray(b2, jnp.float32).reshape(1, H)
    b3_1d = jnp.asarray(b3, jnp.float32).reshape(1)               # SMEM scalar
    return (w1s, w1a, b1_2d, w2_t, b2_2d, w3_row, b3_1d)


def _choose_batch_tile(B, S, A, H, act_itemsize, *, max_tile=2048,
                       act_vmem_budget=16 << 20, min_grid_steps=2):
    """Pick a batch tile from a VMEM budget; keep >=2 grid steps when possible."""
    # Rough per-row footprint: double-buffered f32 state/action/q blocks plus
    # the f32 h1/h2 temporaries and their compute-dtype casts in the body.
    per_row = 2 * 4 * (S + A + 1) + 2 * H * 4 + 2 * H * act_itemsize
    tb = min(max_tile, act_vmem_budget // per_row)
    if B <= tb:
        # Whole batch fits one tile.  Still split into >= min_grid_steps blocks
        # of >= 8 rows so the "parallel" axis can use both TensorCores on v7x
        # (harmless no-op on single-core v5e/v6e).
        if B >= 8 * min_grid_steps:
            tb = ((pl.cdiv(B, min_grid_steps) + 7) // 8) * 8
            if tb >= B:
                tb = B
        else:
            tb = B
    else:
        tb = max(8, (tb // 8) * 8)
    return int(tb)


def critic_forward(state, action, prepared_params, *, max_batch_tile=2048,
                   act_vmem_budget=16 << 20):
    """state: (B, S), action: (B, A) -> q: (B, 1). Compute dtype = weight dtype."""
    w1s, w1a, b1, w2, b2, w3, b3 = prepared_params
    compute_dtype = w2.dtype
    state = jnp.asarray(state, jnp.float32)
    action = jnp.asarray(action, jnp.float32)
    B, S = state.shape
    A = action.shape[1]
    H = w2.shape[1]
    act_itemsize = jnp.dtype(compute_dtype).itemsize

    TB = _choose_batch_tile(B, S, A, H, act_itemsize,
                            max_tile=max_batch_tile,
                            act_vmem_budget=act_vmem_budget)
    grid = (pl.cdiv(B, TB),)

    def batch_spec(shape):
        return pl.BlockSpec(shape, lambda i: (i, 0))

    def const_spec(shape):
        # Constant index_map: block re-used across grid steps, so weights stay
        # VMEM-resident.  At H<=512 the double-buffered copy is <1 MiB, so
        # explicit single-buffering (pl.Buffered(1)) is unnecessary here.
        return pl.BlockSpec(shape, lambda i: (0, 0))

    # Scoped-VMEM estimate: I/O blocks + weights + in-kernel temporaries, with
    # slack.  Keep under v7x's 64 MiB physical; v5e default scoped is 16 MiB.
    weight_bytes = ((S + A) * H + H * H) * act_itemsize + 3 * H * 4
    est = (2 * TB * (S + A + 1) * 4      # double-buffered activation I/O
           + 2 * weight_bytes            # weights (headroom for 2 buffers)
           + 4 * TB * H * 4)             # h1/h2/cast temporaries
    vmem_limit = int(min(max(est + (8 << 20), 32 << 20), 56 << 20))

    kernel = functools.partial(critic_kernel, compute_dtype=compute_dtype)

    return pl.pallas_call(
        kernel,
        out_shape=jax.ShapeDtypeStruct((B, 1), jnp.float32),
        grid=grid,
        in_specs=[
            batch_spec((TB, S)),                             # state tile (f32)
            batch_spec((TB, A)),                             # action tile (f32)
            const_spec((S, H)),                              # W1_state (compute dtype)
            const_spec((A, H)),                              # W1_action (compute dtype)
            const_spec((1, H)),                              # b1 (f32)
            const_spec((H, H)),                              # W2 (compute dtype)
            const_spec((1, H)),                              # b2 (f32)
            const_spec((1, H)),                              # W3 row (f32, VPU path)
            pl.BlockSpec(memory_space=pltpu.MemorySpace.SMEM),  # b3 scalar
        ],
        out_specs=batch_spec((TB, 1)),
        compiler_params=pltpu.CompilerParams(
            dimension_semantics=("parallel",),
            vmem_limit_bytes=vmem_limit),
    )(state, action, w1s, w1a, b1, w2, b2, w3, b3)


def init_critic_params(key, state_size, action_size, hidden_size):
    """PyTorch-style nn.Linear init: U(-1/sqrt(fan_in), 1/sqrt(fan_in))."""
    def linear(k, fan_in, fan_out):
        kw, kb = jax.random.split(k)
        bound = 1.0 / jnp.sqrt(jnp.float32(fan_in))
        w = jax.random.uniform(kw, (fan_out, fan_in), jnp.float32, -bound, bound)
        b = jax.random.uniform(kb, (fan_out,), jnp.float32, -bound, bound)
        return w, b

    k1, k2, k3 = jax.random.split(key, 3)
    w1, b1 = linear(k1, state_size + action_size, hidden_size)
    w2, b2 = linear(k2, hidden_size, hidden_size)
    w3, b3 = linear(k3, hidden_size, 1)
    return (w1, b1, w2, b2, w3, b3)


def critic_reference(state, action, params):
    """Pure-JAX reference (PyTorch nn.Linear layout) for correctness checks."""
    w1, b1, w2, b2, w3, b3 = params
    x = jnp.concatenate([state, action], axis=1)
    h1 = jnp.maximum(x @ w1.T + b1, 0.0)
    h2 = jnp.maximum(h1 @ w2.T + b2, 0.0)
    return h2 @ w3.T + b3


if __name__ == "__main__":
    # Small shapes consistent with the module; hidden a multiple of 128 so
    # activation vregs are lane-dense (module default is 256 in production).
    batch = 64
    state_size = 12
    action_size = 4
    hidden_size = 128

    key = jax.random.PRNGKey(0)
    k_state, k_action, k_params = jax.random.split(key, 3)

    state = jax.random.normal(k_state, (batch, state_size), jnp.float32)
    action = jax.random.normal(k_action, (batch, action_size), jnp.float32)
    params = init_critic_params(k_params, state_size, action_size, hidden_size)

    q_ref = critic_reference(state, action, params)

    # f32 MXU path: tight check against the pure-JAX reference.
    prep_f32 = prepare_critic_params(params, state_size,
                                     compute_dtype=jnp.float32)
    q_f32 = jax.block_until_ready(critic_forward(state, action, prep_f32))
    assert q_f32.shape == (batch, 1), q_f32.shape
    assert jnp.allclose(q_f32, q_ref, atol=1e-5, rtol=1e-5), (q_f32, q_ref)

    # Default bf16 MXU-operand path (f32 accumulate): relaxed tolerance.
    prep_bf16 = prepare_critic_params(params, state_size)   # bf16 default
    q_bf16 = jax.block_until_ready(critic_forward(state, action, prep_bf16))
    assert q_bf16.shape == (batch, 1), q_bf16.shape
    assert jnp.allclose(q_bf16, q_ref, atol=5e-2, rtol=5e-2), (
        float(jnp.max(jnp.abs(q_bf16 - q_ref))))

    print("KERNEL_OK")
</pallas_src>

<mosaic_0001>
module attributes {stable_mosaic.version = 11 : i64} {
  func.func @critic_kernel(%arg0: i32, %arg1: memref<32x12xf32, #tpu.memory_space<vmem>>, %arg2: memref<32x4xf32, #tpu.memory_space<vmem>>, %arg3: memref<12x128xf32, #tpu.memory_space<vmem>>, %arg4: memref<4x128xf32, #tpu.memory_space<vmem>>, %arg5: memref<1x128xf32, #tpu.memory_space<vmem>>, %arg6: memref<128x128xf32, #tpu.memory_space<vmem>>, %arg7: memref<1x128xf32, #tpu.memory_space<vmem>>, %arg8: memref<1x128xf32, #tpu.memory_space<vmem>>, %arg9: memref<1xf32, #tpu.memory_space<smem>>, %arg10: memref<32x1xf32, #tpu.memory_space<vmem>>) attributes {dimension_semantics = [#tpu.dimension_semantics<parallel>], iteration_bounds = array<i64: 2>, scalar_prefetch = 0 : i64, scratch_operands = 0 : i64, tpu.core_type = #tpu.core_type<tc>, window_params = [{transform_indices = @transform_0, window_bounds = array<i64: 32, 12>}, {transform_indices = @transform_1, window_bounds = array<i64: 32, 4>}, {pipeline_mode = #tpu.pipeline_mode<synchronous>, transform_indices = @transform_2, window_bounds = array<i64: 12, 128>}, {pipeline_mode = #tpu.pipeline_mode<synchronous>, transform_indices = @transform_3, window_bounds = array<i64: 4, 128>}, {pipeline_mode = #tpu.pipeline_mode<synchronous>, transform_indices = @transform_4, window_bounds = array<i64: 1, 128>}, {pipeline_mode = #tpu.pipeline_mode<synchronous>, transform_indices = @transform_5, window_bounds = array<i64: 128, 128>}, {pipeline_mode = #tpu.pipeline_mode<synchronous>, transform_indices = @transform_6, window_bounds = array<i64: 1, 128>}, {pipeline_mode = #tpu.pipeline_mode<synchronous>, transform_indices = @transform_7, window_bounds = array<i64: 1, 128>}, {transform_indices = @transform_8, window_bounds = array<i64: 1>}, {transform_indices = @transform_9, window_bounds = array<i64: 32, 1>}]} {
    %c0 = arith.constant 0 : index
    %c0_0 = arith.constant 0 : index
    %0 = vector.load %arg1[%c0, %c0_0] : memref<32x12xf32, #tpu.memory_space<vmem>>, vector<32x12xf32>
    %c0_1 = arith.constant 0 : index
    %c0_2 = arith.constant 0 : index
    %1 = vector.load %arg2[%c0_1, %c0_2] : memref<32x4xf32, #tpu.memory_space<vmem>>, vector<32x4xf32>
    %c0_3 = arith.constant 0 : index
    %c0_4 = arith.constant 0 : index
    %2 = vector.load %arg3[%c0_3, %c0_4] : memref<12x128xf32, #tpu.memory_space<vmem>>, vector<12x128xf32>
    %cst = arith.constant dense<0.000000e+00> : vector<32x128xf32>
    %3 = tpu.matmul %0, %2, %cst {dimension_numbers = #tpu.dot_dimension_numbers<[1], [0], [0], [1], [0, 0, 1, 1], [], []>} : vector<32x12xf32>, vector<12x128xf32>, vector<32x128xf32> -> vector<32x128xf32>
    %c0_5 = arith.constant 0 : index
    %c0_6 = arith.constant 0 : index
    %4 = vector.load %arg4[%c0_5, %c0_6] : memref<4x128xf32, #tpu.memory_space<vmem>>, vector<4x128xf32>
    %cst_7 = arith.constant dense<0.000000e+00> : vector<32x128xf32>
    %5 = tpu.matmul %1, %4, %cst_7 {dimension_numbers = #tpu.dot_dimension_numbers<[1], [0], [0], [1], [0, 0, 1, 1], [], []>} : vector<32x4xf32>, vector<4x128xf32>, vector<32x128xf32> -> vector<32x128xf32>
    %6 = arith.addf %3, %5 : vector<32x128xf32>
    %c0_8 = arith.constant 0 : index
    %c0_9 = arith.constant 0 : index
    %7 = vector.load %arg5[%c0_8, %c0_9] : memref<1x128xf32, #tpu.memory_space<vmem>>, vector<1x128xf32>
    %8 = vector.broadcast %7 : vector<1x128xf32> to vector<32x128xf32>
    %9 = arith.addf %6, %8 : vector<32x128xf32>
    %cst_10 = arith.constant 0.000000e+00 : f32
    %10 = vector.broadcast %cst_10 : f32 to vector<32x128xf32>
    %11 = arith.maximumf %9, %10 : vector<32x128xf32>
    %c0_11 = arith.constant 0 : index
    %c0_12 = arith.constant 0 : index
    %12 = vector.load %arg6[%c0_11, %c0_12] : memref<128x128xf32, #tpu.memory_space<vmem>>, vector<128x128xf32>
    %cst_13 = arith.constant dense<0.000000e+00> : vector<32x128xf32>
    %13 = tpu.matmul %11, %12, %cst_13 {dimension_numbers = #tpu.dot_dimension_numbers<[1], [0], [0], [1], [0, 0, 1, 1], [], []>} : vector<32x128xf32>, vector<128x128xf32>, vector<32x128xf32> -> vector<32x128xf32>
    %c0_14 = arith.constant 0 : index
    %c0_15 = arith.constant 0 : index
    %14 = vector.load %arg7[%c0_14, %c0_15] : memref<1x128xf32, #tpu.memory_space<vmem>>, vector<1x128xf32>
    %15 = vector.broadcast %14 : vector<1x128xf32> to vector<32x128xf32>
    %16 = arith.addf %13, %15 : vector<32x128xf32>
    %cst_16 = arith.constant 0.000000e+00 : f32
    %17 = vector.broadcast %cst_16 : f32 to vector<32x128xf32>
    %18 = arith.maximumf %16, %17 : vector<32x128xf32>
    %c0_17 = arith.constant 0 : index
    %c0_18 = arith.constant 0 : index
    %19 = vector.load %arg8[%c0_17, %c0_18] : memref<1x128xf32, #tpu.memory_space<vmem>>, vector<1x128xf32>
    %20 = vector.broadcast %19 : vector<1x128xf32> to vector<32x128xf32>
    %21 = arith.mulf %18, %20 : vector<32x128xf32>
    %cst_19 = arith.constant dense<0.000000e+00> : vector<32xf32>
    %22 = vector.multi_reduction <add>, %21, %cst_19 [1] : vector<32x128xf32> to vector<32xf32>
    %23 = vector.shape_cast %22 : vector<32xf32> to vector<32x1xf32>
    %c0_20 = arith.constant 0 : index
    %24 = memref.load %arg9[%c0_20] : memref<1xf32, #tpu.memory_space<smem>>
    %25 = vector.broadcast %24 : f32 to vector<32x1xf32>
    %26 = arith.addf %23, %25 : vector<32x1xf32>
    %c0_21 = arith.constant 0 : index
    %c0_22 = arith.constant 0 : index
    %27 = vector.load %arg10[%c0_21, %c0_22] : memref<32x1xf32, #tpu.memory_space<vmem>>, vector<32x1xf32>
    tpu.vector_store %arg10[%c0_21, %c0_22], %26 {strides = array<i32>} : memref<32x1xf32, #tpu.memory_space<vmem>>, vector<32x1xf32>,
    return
  }
  func.func @transform_0(%arg0: i32) -> (i32, i32) {
    %c0_i32 = arith.constant 0 : i32
    %c0_i32_0 = arith.constant 0 : i32
    return %arg0, %c0_i32 : i32, i32
  }
  func.func @transform_1(%arg0: i32) -> (i32, i32) {
    %c0_i32 = arith.constant 0 : i32
    %c0_i32_0 = arith.constant 0 : i32
    return %arg0, %c0_i32 : i32, i32
  }
  func.func @transform_2(%arg0: i32) -> (i32, i32) {
    %c0_i32 = arith.constant 0 : i32
    %c0_i32_0 = arith.constant 0 : i32
    %c0_i32_1 = arith.constant 0 : i32
    return %c0_i32, %c0_i32_0 : i32, i32
  }
  func.func @transform_3(%arg0: i32) -> (i32, i32) {
    %c0_i32 = arith.constant 0 : i32
    %c0_i32_0 = arith.constant 0 : i32
    %c0_i32_1 = arith.constant 0 : i32
    return %c0_i32, %c0_i32_0 : i32, i32
  }
  func.func @transform_4(%arg0: i32) -> (i32, i32) {
    %c0_i32 = arith.constant 0 : i32
    %c0_i32_0 = arith.constant 0 : i32
    %c0_i32_1 = arith.constant 0 : i32
    return %c0_i32, %c0_i32_0 : i32, i32
  }
  func.func @transform_5(%arg0: i32) -> (i32, i32) {
    %c0_i32 = arith.constant 0 : i32
    %c0_i32_0 = arith.constant 0 : i32
    %c0_i32_1 = arith.constant 0 : i32
    return %c0_i32, %c0_i32_0 : i32, i32
  }
  func.func @transform_6(%arg0: i32) -> (i32, i32) {
    %c0_i32 = arith.constant 0 : i32
    %c0_i32_0 = arith.constant 0 : i32
    %c0_i32_1 = arith.constant 0 : i32
    return %c0_i32, %c0_i32_0 : i32, i32
  }
  func.func @transform_7(%arg0: i32) -> (i32, i32) {
    %c0_i32 = arith.constant 0 : i32
    %c0_i32_0 = arith.constant 0 : i32
    %c0_i32_1 = arith.constant 0 : i32
    return %c0_i32, %c0_i32_0 : i32, i32
  }
  func.func @transform_8(%arg0: i32) -> i32 {
    %c0_i32 = arith.constant 0 : i32
    %c0_i32_0 = arith.constant 0 : i32
    return %c0_i32 : i32
  }
  func.func @transform_9(%arg0: i32) -> (i32, i32) {
    %c0_i32 = arith.constant 0 : i32
    %c0_i32_0 = arith.constant 0 : i32
    return %arg0, %c0_i32 : i32, i32
  }
}

</mosaic_0001>

<bundles_post_ra>
// kernel: tpu_custom_call.1
= control target key start
LH: loop header
LB: loop body
LE: loop exit
PB: predicated region body
PF: predicated region fallthrough
CT: control target
= control target key end

     0   :  { %s1024_s11 = smov 0   ;;  %s1131_s0 = inlined_call_operand.vmem [shape: f32[64,12], index: 0, kind: input, shape index: {}]   ;;  %s1132_s1 = inlined_call_operand.vmem [shape: f32[64,4], index: 1, kind: input, shape index: {}]   ;;  %s1133_s2 = inlined_call_operand.vmem [shape: f32[12,128], index: 2, kind: input, shape index: {}]   ;;  %s1134_s3 = inlined_call_operand.vmem [shape: f32[4,128], index: 3, kind: input, shape index: {}]   ;;  %s1135_s4 = inlined_call_operand.vmem [shape: f32[1,128], index: 4, kind: input, shape index: {}]   ;;  %s1136_s5 = inlined_call_operand.vmem [shape: f32[128,128], index: 5, kind: input, shape index: {}]   ;;  %s1137_s6 = inlined_call_operand.vmem [shape: f32[1,128], index: 6, kind: input, shape index: {}]   ;;  %s1138_s7 = inlined_call_operand.vmem [shape: f32[1,128], index: 7, kind: input, shape index: {}]   ;;  %s1139_s8 = inlined_call_operand.<no memory space> [shape: f32[1], index: 8, kind: input, shape index: {}]   ;;  %s1140_s9 = inlined_call_operand.vmem [shape: f32[64,1], index: 9, kind: output, shape index: {}]  }
   0x1   :  { %14 = sst [smem:[#allocation2]] %s1139_s8 }
   0x2 LB: > { %s798_s12 = sadd.s32 4294967295, %s968_s11   ;;  %p802_p0 = scmp.ge.s32.totalorder %s968_s11, 1  ;;  %s968_s11 = sphi %s1024_s11, %s20_s11  }
   0x3   : > { %p300_p1 = scmp.lt.s32.totalorder %s968_s11, 3 }
   0x5   : > { %p301_p2 = pnand %p802_p0, %p300_p1 }
   0x6   : > { %v369_v0 = vld [vmem:[%s1134_s3] sm:$0xf] (!%p301_p2)  ;;  %vm383_vm0 = vcmask (!%p301_p2), 1043456   ;;  %s803_s8 = sshll.u32 (!%p301_p2), %s798_s12, 2  ;;  %v368_v2 = vld [vmem:[%s1133_s2 + $0x8] sm:$0xf] (!%p301_p2) }
   0x7   : > { %304 = sbr.rel (%p301_p2) target bundleno = 617 (0x269), region = 56  ;;  %v367_v1 = vld [vmem:[%s1133_s2] sm:$0xff] (!%p301_p2)  ;;  %855 = vmatprep.subr.msk.mxu0 (!%p301_p2), %vm383_vm0, %v369_v0  ;;  %p342_p3 = scmp.lt.s32.totalorder (!%p301_p2), %s803_s8, 7  ;;  %vm970_vm1 = vmmov (!%p301_p2), 1   ;;  %v589_v6 = vld [vmem:[%s1136_s5 + $0x8] sm:$0xff] (!%p301_p2)  ;;  %v590_v7 = vld [vmem:[%s1136_s5 + $0x10] sm:$0xff] (!%p301_p2) }
   0x8   : > { %v588_v3 = vld [vmem:[%s1136_s5] sm:$0xff] (!%p301_p2)  ;;  %856 = vmatpush3.msk.msra.mxu0 (!%p301_p2), %vm383_vm0, %v369_v0  ;;  %v911_v4 = vpack.c.bf16 (!%p301_p2), %v368_v2, %v367_v1  ;;  %vm1044_vm2 = vmpackc.low (!%p301_p2), %vm383_vm0, %vm970_vm1  ;;  %v591_v9 = vld [vmem:[%s1136_s5 + $0x18] sm:$0xff] (!%p301_p2)  ;;  %vm370_vm3 = vcmask (!%p301_p2), 31744   ;;  %vm472_vm4 = vcmask (!%p301_p2), 97280   ;;  %s719_s23 = sld [smem:[#allocation2]] (!%p301_p2)  ;;  %vm725_vm5 = vcmask (!%p301_p2), 7168  }
   0x9   : > { %v917_v8 = vpack.c.bf16 (!%p301_p2), %v589_v6, %v588_v3  ;;  %v921_v10 = vpack.c.bf16 (!%p301_p2), %v591_v9, %v590_v7  ;;  %v592_v11 = vld [vmem:[%s1136_s5 + $0x20] sm:$0xff] (!%p301_p2)  ;;  %v593_v12 = vld [vmem:[%s1136_s5 + $0x28] sm:$0xff] (!%p301_p2)  ;;  %v594_v17 = vld [vmem:[%s1136_s5 + $0x30] sm:$0xff] (!%p301_p2) }
   0xa   : > { %913 = vmatprep.subr.msk.bf16.mxu0 (!%p301_p2), %vm1044_vm2, %v911_v4  ;;  %v925_v16 = vpack.c.bf16 (!%p301_p2), %v593_v12, %v592_v11  ;;  %v595_v18 = vld [vmem:[%s1136_s5 + $0x38] sm:$0xff] (!%p301_p2)  ;;  %v596_v22 = vld [vmem:[%s1136_s5 + $0x40] sm:$0xff] (!%p301_p2)  ;;  %v597_v23 = vld [vmem:[%s1136_s5 + $0x48] sm:$0xff] (!%p301_p2) }
   0xb   : > { %918 = vmatprep.subr.bf16.mxu1 (!%p301_p2), %v917_v8  ;;  %v929_v21 = vpack.c.bf16 (!%p301_p2), %v595_v18, %v594_v17  ;;  %v933_v26 = vpack.c.bf16 (!%p301_p2), %v597_v23, %v596_v22  ;;  %v598_v27 = vld [vmem:[%s1136_s5 + $0x50] sm:$0xff] (!%p301_p2)  ;;  %v599_v28 = vld [vmem:[%s1136_s5 + $0x58] sm:$0xff] (!%p301_p2)  ;;  %v600_v31 = vld [vmem:[%s1136_s5 + $0x60] sm:$0xff] (!%p301_p2) }
   0xc   : > { %920 = vmatpush3.bf16.msra.mxu1 (!%p301_p2), %v917_v8  ;;  %v937_v30 = vpack.c.bf16 (!%p301_p2), %v599_v28, %v598_v27  ;;  %v601_v32 = vld [vmem:[%s1136_s5 + $0x68] sm:$0xff] (!%p301_p2)  ;;  %v602_v34 = vld [vmem:[%s1136_s5 + $0x70] sm:$0xff] (!%p301_p2)  ;;  %v603_v35 = vld [vmem:[%s1136_s5 + $0x78] sm:$0xff] (!%p301_p2) }
   0xd   : > { %922 = vmatprep.subr.bf16.mxu1 (!%p301_p2), %v921_v10  ;;  %v941_v33 = vpack.c.bf16 (!%p301_p2), %v601_v32, %v600_v31  ;;  %v945_v36 = vpack.c.bf16 (!%p301_p2), %v603_v35, %v602_v34  ;;  %v819_v37 = vld [vmem:[%s1135_s4] ss:$0 sm:$0xff] (!%p301_p2) }
   0xe   : > { %s1144_s8 = smov (!%p342_p3, %s803_s8), 7  ;;  %v820_v50 = vld [vmem:[%s1137_s6] ss:$0 sm:$0xff] }
   0xf   : > { %s1059_s27 = sshll.u32 %s1144_s8, 3  ;;  %v821_v55 = vld [vmem:[%s1138_s7] ss:$0 sm:$0xff] }
  0x10   : > { %s351_s14 = scalar_lea.vmem %s1132_s1, %s1059_s27  ;;  %s345_s16 = scalar_lea.vmem %s1131_s0, %s1059_s27  ;;  %924 = vmatpush3.bf16.msra.mxu1 %v921_v10 }
  0x11   : > { %v363_v13 = vld [vmem:[%s351_s14] sm:$0xff]  ;;  %v364_v14 = vld [vmem:[%s351_s14 + $0x8] sm:$0xff]  ;;  %v365_v15 = vld [vmem:[%s351_s14 + $0x10] sm:$0xff]  ;;  %926 = vmatprep.subr.bf16.mxu1 %v925_v16  ;;  %s357_s26 = scalar_lea.vmem %s1140_s9, %s1059_s27 }
  0x12   : > { %857 = vmatprep.mubr.msk.f32.mxu0 %vm370_vm3, %v363_v13  ;;  %v366_v19 = vld [vmem:[%s351_s14 + $0x18] sm:$0xff]  ;;  %v359_v20 = vld [vmem:[%s345_s16] sm:$0xff]  ;;  %v360_v24 = vld [vmem:[%s345_s16 + $0x8] sm:$0xff] }
  0x13   : > { %858 = vmatmul.mubr.msk.f32.vlgmr.msra.gmra.mrb[0].mxu0 %vm370_vm3, %v364_v14  ;;  %v361_v25 = vld [vmem:[%s345_s16 + $0x10] sm:$0xff]  ;;  %v362_v29 = vld [vmem:[%s345_s16 + $0x18] sm:$0xff] }
  0x14   : > { %916 = vmatpush3.bf16.msk.msra.mxu0 %vm1044_vm2, %v911_v4  ;;  %860 = vmatprep.mubr.msk.f32.mxu0 %vm370_vm3, %v365_v15  ;;  %v720_v4 = vstv %s719_s23 }
  0x15   : > { %928 = vmatpush3.bf16.msra.mxu1 %v925_v16 }
  0x16   : > { %930 = vmatprep.subr.bf16.mxu1 %v929_v21 }
  0x17   : > { %861 = vmatmul.mubr.msk.f32.gmra.mrb[2].mxu0 %vm370_vm3, %v366_v19 }
  0x18   : > { %867 = vmatprep.mubr.msk.f32.mxu0 %vm472_vm4, %v359_v20 }
  0x19   : > { %932 = vmatpush3.bf16.msra.mxu1 %v929_v21 }
  0x1a   : > { %934 = vmatprep.subr.bf16.mxu1 %v933_v26 }
  0x1b   : > { %868 = vmatmul.mubr.msk.f32.vlgmr.msra.gmra.mrb[0].mxu0 %vm472_vm4, %v360_v24 }
  0x1c   : > { %870 = vmatprep.mubr.msk.f32.mxu0 %vm472_vm4, %v361_v25 }
  0x1d   : > { %936 = vmatpush3.bf16.msra.mxu1 %v933_v26 }
  0x1e   : > { %938 = vmatprep.subr.bf16.mxu1 %v937_v30 }
  0x1f   : > { %871 = vmatmul.mubr.msk.f32.gmra.mrb[2].mxu0 %vm472_vm4, %v362_v29 }
  0x21   : > { %940 = vmatpush3.bf16.msra.mxu1 %v937_v30 }
  0x22   : > { %942 = vmatprep.subr.bf16.mxu1 %v941_v33 }
  0x25   : > { %944 = vmatpush3.bf16.msra.mxu1 %v941_v33 }
  0x26   : > { %946 = vmatprep.subr.bf16.mxu1 %v945_v36 }
  0x29   : > { %948 = vmatpush3.bf16.msra.mxu1 %v945_v36 }
  0xee   : > { %v869_v38 = vpop.f32.mrb[0].mxu0 }
  0xef   : > { %v581_v39 = vadd.f32 %v869_v38, %v819_v37  ;;  %v554_v40 = vpop.f32.mrb[1].mxu0 }
  0xf0   : > { %v580_v41 = vadd.f32 %v819_v37, %v554_v40 }
  0xf1   : > { %v585_v44 = vmax.f32 %v581_v39, 0.0 }
  0xf2   : > { %v872_v42 = vpop.f32.mrb[2].mxu0  ;;  %v584_v43 = vmax.f32 %v580_v41, 0.0 }
  0xf3   : > { %v583_v45 = vadd.f32 %v872_v42, %v819_v37  ;;  %v564_v46 = vpop.f32.mrb[3].mxu0 }
  0xf4   : > { %v582_v47 = vadd.f32 %v819_v37, %v564_v46  ;;  %905 = vmatprep.mubr.f32.mxu1 %v584_v43 }
  0xf5   : > { %906 = vmatmul.mubr.f32.vlgmr.msra.gmra.mrb[0].mxu1 %v585_v44  ;;  %v587_v49 = vmax.f32 %v583_v45, 0.0 }
  0xf6   : > { %v586_v48 = vmax.f32 %v582_v47, 0.0 }
  0xf8   : > { %908 = vmatprep.mubr.f32.mxu1 %v586_v48 }
  0xf9   : > { %909 = vmatmul.mubr.f32.gmra.mrb[2].mxu1 %v587_v49 }
 0x1c8   : > { %v907_v51 = vpop.f32.mrb[0].mxu1 }
 0x1c9   : > { %v677_v52 = vpop.f32.mrb[1].mxu1  ;;  %v683_v53 = vadd.f32 %v907_v51, %v820_v50 }
 0x1ca   : > { %v678_v54 = vadd.f32 %v820_v50, %v677_v52 }
 0x1cb   : > { %v697_v59 = vmax.f32 %v683_v53, 0.0 }
 0x1cc   : > { %v696_v56 = vmax.f32 %v678_v54, 0.0  ;;  %v910_v57 = vpop.f32.mrb[2].mxu1 }
 0x1cd   : > { %v687_v58 = vpop.f32.mrb[3].mxu1  ;;  %v693_v60 = vadd.f32 %v910_v57, %v820_v50  ;;  %v708_v1 = vmul.f32 %v821_v55, %v697_v59 }
 0x1ce   : > { %v688_v61 = vadd.f32 %v820_v50, %v687_v58  ;;  %v707_v62 = vmul.f32 %v821_v55, %v696_v56 }
 0x1cf   : > { %v699_v0 = vmax.f32 %v693_v60, 0.0 }
 0x1d0   : > { %v698_v63 = vmax.f32 %v688_v61, 0.0  ;;  %711 = vadd.xlane.f32.xlu0 %v707_v62 }
 0x1d1   : > { %v710_v3 = vmul.f32 %v821_v55, %v699_v0 }
 0x1d2   : > { %v709_v2 = vmul.f32 %v821_v55, %v698_v63 }
 0x1d4   : > { %713 = vadd.xlane.f32.xlu0 %v708_v1  ;;  %715 = vadd.xlane.f32.xlu1 %v709_v2 }
 0x1d8   : > { %717 = vadd.xlane.f32.xlu1 %v710_v3 }
 0x25d   : > { %v712_v5 = vpop.xlane.xlu0 %711 }
 0x25e   : > { %v721_v6 = vadd.f32 %v720_v4, %v712_v5 }
 0x260   : > { %726 = vst.msk [vmem:[%s357_s26] sm:$0xff] %vm725_vm5, %v721_v6 }
 0x261   : > { %v714_v7 = vpop.xlane.xlu0 %713  ;;  %v716_v8 = vpop.xlane.xlu1 %715 }
 0x262   : > { %v722_v9 = vadd.f32 %v720_v4, %v714_v7  ;;  %v723_v10 = vadd.f32 %v720_v4, %v716_v8 }
 0x264   : > { %727 = vst.msk [vmem:[%s357_s26 + $0x8] sm:$0xff] %vm725_vm5, %v722_v9  ;;  %728 = vst.msk [vmem:[%s357_s26 + $0x10] sm:$0xff] %vm725_vm5, %v723_v10 }
 0x265   : > { %v718_v11 = vpop.xlane.xlu1 %717 }
 0x266   : > { %v724_v12 = vadd.f32 %v720_v4, %v718_v11 }
 0x268   : > { %729 = vst.msk [vmem:[%s357_s26 + $0x18] sm:$0xff] %vm725_vm5, %v724_v12 }
 0x269 PF: > { %s20_s11 = sadd.s32 1, %s968_s11  }
 0x26a   : > { %p17_p4 = scmp.ge.s32.totalorder %s20_s11, 4  }
 0x26c   :  { %19 = sbr.rel (!%p17_p4) target bundleno = 2 (0x2), region = 89 }

</bundles_post_ra>
